<compile_context>
chip_gen: v7x
topology: tpu7x:2x2x1
jax: 0.10.0
libtpu: 0.0.40
codegen_flags: <defaults>
</compile_context>

<pallas_src>
import functools
import math

import jax
import jax.numpy as jnp
from jax import lax
from jax.experimental import pallas as pl
from jax.experimental.pallas import tpu as pltpu


_COMPUTE_DTYPE = jnp.bfloat16
# Safe on v7x (64 MiB/TC); on v5e/v6e (128 MiB/TC) this could be raised to ~96 MiB
# to allow full-sequence-resident K/V at longer sequence lengths.
_VMEM_LIMIT = 48 * 1024 * 1024


def _round_up(x, m):
    return ((x + m - 1) // m) * m


# ---------------------------------------------------------------------------
# Kernel 1: fused q/k/v projections, head-major output (B, H, T_pad, head_dim).
# ---------------------------------------------------------------------------
def _proj_kernel(xq_ref, xk_ref, xv_ref, w_ref, qo_ref, ko_ref, vo_ref, *,
                 n_heads, head_dim, t_valid, t_pad, row_tile):
    # x*_ref: (1, row_tile, D) bf16 activations (batch-major)
    # w_ref : (3, D, D) bf16 weights (PyTorch (out, in) layout; wq pre-scaled)
    # *o_ref: (1, H, row_tile, d) bf16 head-major projections
    dn = (((1,), (1,)), ((), ()))  # contract last dims -> x @ W.T
    for p, (x_ref, o_ref) in enumerate(
            ((xq_ref, qo_ref), (xk_ref, ko_ref), (xv_ref, vo_ref))):
        x = x_ref[0]                                            # (row_tile, D)
        y = lax.dot_general(x, w_ref[p], dn,
                            preferred_element_type=jnp.float32)  # (row_tile, D)
        y = y.astype(o_ref.dtype)
        for h in range(n_heads):                                 # leading-dim stores
            o_ref[0, h] = y[:, h * head_dim:(h + 1) * head_dim]

    # Zero the padded tail rows (only traced when the sequence is ragged) so the
    # attention kernel never multiplies by uninitialized K/V data.
    pad = t_pad - t_valid
    if pad > 0:
        n_rt = t_pad // row_tile
        local_valid = row_tile - pad

        @pl.when(pl.program_id(1) == n_rt - 1)
        def _zero_tail():
            z = jnp.zeros((n_heads, pad, head_dim), dtype=qo_ref.dtype)
            qo_ref[0, :, local_valid:, :] = z
            ko_ref[0, :, local_valid:, :] = z
            vo_ref[0, :, local_valid:, :] = z


# ---------------------------------------------------------------------------
# Kernel 2: flash attention.  Grid (batch, q-tiles); K/V resident per batch,
# kv reduction is an in-kernel chunked loop with online softmax.
# ---------------------------------------------------------------------------
def _flash_kernel(q_ref, k_ref, v_ref, o_ref, m_ref, l_ref, acc_ref, *,
                  kv_chunk, kv_valid):
    # q_ref: (1, H, Tq, d) bf16 (1/scale folded into the q projection)
    # k_ref, v_ref: (1, H, T_pad, d) bf16, resident across the q-tile axis
    # o_ref: (1, H, Tq, d); scratch: m/l (H, Tq, 1) f32, acc (H, Tq, d) f32
    t_pad = k_ref.shape[2]
    n_chunks = t_pad // kv_chunk
    ragged = t_pad != kv_valid

    m_ref[...] = jnp.full(m_ref.shape, -jnp.inf, dtype=jnp.float32)
    l_ref[...] = jnp.zeros(l_ref.shape, dtype=jnp.float32)
    acc_ref[...] = jnp.zeros(acc_ref.shape, dtype=jnp.float32)

    q = q_ref[0]                                   # (H, Tq, d)

    dn_qk = (((2,), (2,)), ((0,), (0,)))           # q·k^T batched over heads
    dn_pv = (((2,), (1,)), ((0,), (0,)))           # p·v   batched over heads

    def kv_step(off, mask_tail):
        kc = k_ref[0, :, pl.ds(off, kv_chunk), :]  # (H, Ck, d)
        vc = v_ref[0, :, pl.ds(off, kv_chunk), :]  # (H, Ck, d)
        s = lax.dot_general(q, kc, dn_qk,
                            preferred_element_type=jnp.float32)   # (H, Tq, Ck)
        if mask_tail:  # only the last chunk can contain padded keys
            key_idx = off + lax.broadcasted_iota(jnp.int32, (1, 1, kv_chunk), 2)
            s = jnp.where(key_idx < kv_valid, s, -jnp.inf)
        m_prev = m_ref[...]
        m_new = jnp.maximum(m_prev, jnp.max(s, axis=-1, keepdims=True))
        alpha = jnp.exp(m_prev - m_new)
        p = jnp.exp(s - m_new)
        l_ref[...] = alpha * l_ref[...] + jnp.sum(p, axis=-1, keepdims=True)
        pv = lax.dot_general(p.astype(vc.dtype), vc, dn_pv,
                             preferred_element_type=jnp.float32)  # (H, Tq, d)
        acc_ref[...] = alpha * acc_ref[...] + pv
        m_ref[...] = m_new

    n_unmasked = n_chunks - 1 if ragged else n_chunks
    if n_unmasked > 0:
        def _body(c, carry):
            kv_step(pl.multiple_of(c * kv_chunk, kv_chunk), mask_tail=False)
            return carry
        lax.fori_loop(0, n_unmasked, _body, 0, unroll=(n_unmasked <= 8))
    if ragged:
        kv_step((n_chunks - 1) * kv_chunk, mask_tail=True)

    inv_l = pl.reciprocal(l_ref[...], approx=True)         # EUP, ~free slot
    o_ref[0] = (acc_ref[...] * inv_l).astype(o_ref.dtype)  # single lane-dense store


def scaled_dot_attention(q, k, v, mask, wq, wk, wv, n_heads):
    """Pallas implementation of ScaledDotAttention.forward.

    q, k, v: (tstep, bsize, model_dim); mask: (tstep, bsize)
    wq, wk, wv: (model_dim, model_dim) PyTorch Linear weights (out, in), no bias.
    Returns (v, out, mask) with out: (tstep, bsize, model_dim).
    """
    tstep, bsize, model_dim = q.shape
    assert model_dim % n_heads == 0
    head_dim = model_dim // n_heads
    scale = math.sqrt(model_dim / n_heads)

    # --- tiling: decoupled q tile and kv chunk ------------------------------------
    if tstep >= 256:
        tq = 256
    elif tstep >= 128:
        tq = 128
    else:
        tq = _round_up(tstep, 8)
    t_pad = _round_up(tstep, tq)
    kv_chunk = min(512, t_pad)
    if t_pad % kv_chunk != 0:
        kv_chunk = tq                       # always divides t_pad
    row_tile = kv_chunk                     # projection row tile
    n_rt = t_pad // row_tile
    n_q = t_pad // tq

    # --- wrapper-side prep: one fused transpose+cast per activation ----------------
    # (The (T,B)->(B,T) reorder cannot be expressed with a legal Pallas BlockSpec on
    #  the time-major input, so it stays in the wrapper; stack/pad/extra-cast passes
    #  from the previous version are gone.)
    qb = jnp.transpose(q, (1, 0, 2)).astype(_COMPUTE_DTYPE)
    kb = jnp.transpose(k, (1, 0, 2)).astype(_COMPUTE_DTYPE)
    vb = jnp.transpose(v, (1, 0, 2)).astype(_COMPUTE_DTYPE)
    # Fold 1/scale into the q weight so score tiles never need scaling.
    w_all = jnp.stack([wq * (1.0 / scale), wk, wv]).astype(_COMPUTE_DTYPE)

    # --- Kernel 1: projections -> head-major (B, H, T_pad, d) bf16 -----------------
    proj_kernel = functools.partial(
        _proj_kernel, n_heads=n_heads, head_dim=head_dim,
        t_valid=tstep, t_pad=t_pad, row_tile=row_tile)
    proj_shape = jax.ShapeDtypeStruct((bsize, n_heads, t_pad, head_dim),
                                      _COMPUTE_DTYPE)
    act_spec = pl.BlockSpec((1, row_tile, model_dim), lambda b, i: (b, i, 0))
    head_spec = pl.BlockSpec((1, n_heads, row_tile, head_dim),
                             lambda b, i: (b, 0, i, 0))
    qp, kp, vp = pl.pallas_call(
        proj_kernel,
        out_shape=(proj_shape, proj_shape, proj_shape),
        grid_spec=pltpu.PrefetchScalarGridSpec(
            num_scalar_prefetch=0,
            grid=(bsize, n_rt),
            in_specs=[
                act_spec, act_spec, act_spec,
                pl.BlockSpec((3, model_dim, model_dim),
                             lambda b, i: (0, 0, 0)),          # weights resident
            ],
            out_specs=[head_spec, head_spec, head_spec],
        ),
        compiler_params=pltpu.CompilerParams(
            dimension_semantics=("parallel", "parallel"),
            vmem_limit_bytes=_VMEM_LIMIT),
    )(qb, kb, vb, w_all)

    # --- Kernel 2: flash attention, K/V resident per batch --------------------------
    flash_kernel = functools.partial(_flash_kernel, kv_chunk=kv_chunk,
                                     kv_valid=tstep)
    out_bhtd = pl.pallas_call(
        flash_kernel,
        out_shape=jax.ShapeDtypeStruct((bsize, n_heads, t_pad, head_dim), q.dtype),
        grid_spec=pltpu.PrefetchScalarGridSpec(
            num_scalar_prefetch=0,
            grid=(bsize, n_q),
            in_specs=[
                pl.BlockSpec((1, n_heads, tq, head_dim),
                             lambda b, qi: (b, 0, qi, 0)),        # q tile
                pl.BlockSpec((1, n_heads, t_pad, head_dim),
                             lambda b, qi: (b, 0, 0, 0)),         # K resident over qi
                pl.BlockSpec((1, n_heads, t_pad, head_dim),
                             lambda b, qi: (b, 0, 0, 0)),         # V resident over qi
            ],
            out_specs=pl.BlockSpec((1, n_heads, tq, head_dim),
                                   lambda b, qi: (b, 0, qi, 0)),
            scratch_shapes=[
                pltpu.VMEM((n_heads, tq, 1), jnp.float32),        # m
                pltpu.VMEM((n_heads, tq, 1), jnp.float32),        # l
                pltpu.VMEM((n_heads, tq, head_dim), jnp.float32),  # acc
            ],
        ),
        compiler_params=pltpu.CompilerParams(
            dimension_semantics=("parallel", "parallel"),
            vmem_limit_bytes=_VMEM_LIMIT),
    )(qp, kp, vp)

    # (B, H, T_pad, d) -> drop query padding -> (T, B, model_dim)
    out = jnp.transpose(out_bhtd[:, :, :tstep, :], (2, 0, 1, 3)).reshape(
        tstep, bsize, model_dim)
    # TODO(synk): mask is accepted but never applied and lin_o is skipped — this
    # matches the reference forward() exactly.
    return v, out, mask


def _reference(q, k, v, wq, wk, wv, n_heads):
    tstep, bsize, model_dim = q.shape
    head_dim = model_dim // n_heads
    scale = math.sqrt(model_dim / n_heads)
    qp = (q @ wq.T).reshape(tstep, bsize, n_heads, head_dim).transpose(1, 2, 0, 3)
    vp = (v @ wv.T).reshape(tstep, bsize, n_heads, head_dim).transpose(1, 2, 0, 3)
    kp = (k @ wk.T).reshape(tstep, bsize, n_heads, head_dim).transpose(1, 2, 3, 0)
    z = jax.nn.softmax((qp @ kp) / scale, axis=-1)
    out = (z @ vp).transpose(2, 0, 1, 3).reshape(tstep, bsize, model_dim)
    return out


if __name__ == "__main__":
    tstep, bsize, model_dim, n_heads = 8, 2, 32, 4

    key = jax.random.PRNGKey(0)
    kq, kk, kv, kwq, kwk, kwv = jax.random.split(key, 6)

    q = jax.random.normal(kq, (tstep, bsize, model_dim), dtype=jnp.float32)
    k = jax.random.normal(kk, (tstep, bsize, model_dim), dtype=jnp.float32)
    v = jax.random.normal(kv, (tstep, bsize, model_dim), dtype=jnp.float32)
    mask = jnp.ones((tstep, bsize), dtype=jnp.float32)

    # Deterministic PyTorch-style Linear init: U(-1/sqrt(in), 1/sqrt(in)), no bias.
    bound = 1.0 / math.sqrt(model_dim)
    wq = jax.random.uniform(kwq, (model_dim, model_dim), jnp.float32, -bound, bound)
    wk = jax.random.uniform(kwk, (model_dim, model_dim), jnp.float32, -bound, bound)
    wv = jax.random.uniform(kwv, (model_dim, model_dim), jnp.float32, -bound, bound)

    v_out, out, mask_out = scaled_dot_attention(q, k, v, mask, wq, wk, wv, n_heads)
    jax.block_until_ready(out)

    ref = _reference(q, k, v, wq, wk, wv, n_heads)
    # bf16 matmul operands (f32 accumulation) + approx reciprocal => loosened tolerance.
    assert jnp.allclose(out, ref, atol=3e-2, rtol=3e-2), "mismatch vs reference"
    assert jnp.array_equal(v_out, v) and jnp.array_equal(mask_out, mask)

    print("KERNEL_OK")
</pallas_src>

<mosaic_0001>
module attributes {stable_mosaic.version = 11 : i64} {
  func.func @_proj_kernel(%arg0: i32, %arg1: i32, %arg2: memref<1x8x32xbf16, #tpu.memory_space<vmem>>, %arg3: memref<1x8x32xbf16, #tpu.memory_space<vmem>>, %arg4: memref<1x8x32xbf16, #tpu.memory_space<vmem>>, %arg5: memref<3x32x32xbf16, #tpu.memory_space<vmem>>, %arg6: memref<1x4x8x8xbf16, #tpu.memory_space<vmem>>, %arg7: memref<1x4x8x8xbf16, #tpu.memory_space<vmem>>, %arg8: memref<1x4x8x8xbf16, #tpu.memory_space<vmem>>) attributes {dimension_semantics = [#tpu.dimension_semantics<parallel>, #tpu.dimension_semantics<parallel>], iteration_bounds = array<i64: 2, 1>, scalar_prefetch = 0 : i64, scratch_operands = 0 : i64, tpu.core_type = #tpu.core_type<tc>, window_params = [{transform_indices = @transform_0, window_bounds = array<i64: 1, 8, 32>}, {transform_indices = @transform_1, window_bounds = array<i64: 1, 8, 32>}, {transform_indices = @transform_2, window_bounds = array<i64: 1, 8, 32>}, {pipeline_mode = #tpu.pipeline_mode<synchronous>, transform_indices = @transform_3, window_bounds = array<i64: 3, 32, 32>}, {transform_indices = @transform_4, window_bounds = array<i64: 1, 4, 8, 8>}, {transform_indices = @transform_5, window_bounds = array<i64: 1, 4, 8, 8>}, {transform_indices = @transform_6, window_bounds = array<i64: 1, 4, 8, 8>}]} {
    %c0 = arith.constant 0 : index
    %c0_0 = arith.constant 0 : index
    %c0_1 = arith.constant 0 : index
    %0 = vector.load %arg2[%c0, %c0_0, %c0_1] : memref<1x8x32xbf16, #tpu.memory_space<vmem>>, vector<1x8x32xbf16>
    %1 = vector.shape_cast %0 : vector<1x8x32xbf16> to vector<8x32xbf16>
    %c0_2 = arith.constant 0 : index
    %c0_3 = arith.constant 0 : index
    %c0_4 = arith.constant 0 : index
    %2 = vector.load %arg5[%c0_2, %c0_3, %c0_4] : memref<3x32x32xbf16, #tpu.memory_space<vmem>>, vector<1x32x32xbf16>
    %3 = vector.shape_cast %2 : vector<1x32x32xbf16> to vector<32x32xbf16>
    %cst = arith.constant dense<0.000000e+00> : vector<8x32xf32>
    %4 = tpu.matmul %1, %3, %cst {dimension_numbers = #tpu.dot_dimension_numbers<[1], [1], [0], [0], [0, 0, 1, 0], [], []>} : vector<8x32xbf16>, vector<32x32xbf16>, vector<8x32xf32> -> vector<8x32xf32>
    %5 = arith.truncf %4 : vector<8x32xf32> to vector<8x32xbf16>
    %6 = vector.extract_strided_slice %5 {offsets = [0, 0], sizes = [8, 8], strides = [1, 1]} : vector<8x32xbf16> to vector<8x8xbf16>
    %c0_5 = arith.constant 0 : index
    %c0_6 = arith.constant 0 : index
    %c0_7 = arith.constant 0 : index
    %c0_8 = arith.constant 0 : index
    %7 = vector.load %arg6[%c0_5, %c0_6, %c0_7, %c0_8] : memref<1x4x8x8xbf16, #tpu.memory_space<vmem>>, vector<1x1x8x8xbf16>
    %8 = vector.shape_cast %7 : vector<1x1x8x8xbf16> to vector<8x8xbf16>
    %9 = vector.shape_cast %6 : vector<8x8xbf16> to vector<1x1x8x8xbf16>
    tpu.vector_store %arg6[%c0_5, %c0_6, %c0_7, %c0_8], %9 {strides = array<i32>} : memref<1x4x8x8xbf16, #tpu.memory_space<vmem>>, vector<1x1x8x8xbf16>,
    %10 = vector.extract_strided_slice %5 {offsets = [0, 8], sizes = [8, 8], strides = [1, 1]} : vector<8x32xbf16> to vector<8x8xbf16>
    %c0_9 = arith.constant 0 : index
    %c1 = arith.constant 1 : index
    %c0_10 = arith.constant 0 : index
    %c0_11 = arith.constant 0 : index
    %11 = vector.load %arg6[%c0_9, %c1, %c0_10, %c0_11] : memref<1x4x8x8xbf16, #tpu.memory_space<vmem>>, vector<1x1x8x8xbf16>
    %12 = vector.shape_cast %11 : vector<1x1x8x8xbf16> to vector<8x8xbf16>
    %13 = vector.shape_cast %10 : vector<8x8xbf16> to vector<1x1x8x8xbf16>
    tpu.vector_store %arg6[%c0_9, %c1, %c0_10, %c0_11], %13 {strides = array<i32>} : memref<1x4x8x8xbf16, #tpu.memory_space<vmem>>, vector<1x1x8x8xbf16>,
    %14 = vector.extract_strided_slice %5 {offsets = [0, 16], sizes = [8, 8], strides = [1, 1]} : vector<8x32xbf16> to vector<8x8xbf16>
    %c0_12 = arith.constant 0 : index
    %c2 = arith.constant 2 : index
    %c0_13 = arith.constant 0 : index
    %c0_14 = arith.constant 0 : index
    %15 = vector.load %arg6[%c0_12, %c2, %c0_13, %c0_14] : memref<1x4x8x8xbf16, #tpu.memory_space<vmem>>, vector<1x1x8x8xbf16>
    %16 = vector.shape_cast %15 : vector<1x1x8x8xbf16> to vector<8x8xbf16>
    %17 = vector.shape_cast %14 : vector<8x8xbf16> to vector<1x1x8x8xbf16>
    tpu.vector_store %arg6[%c0_12, %c2, %c0_13, %c0_14], %17 {strides = array<i32>} : memref<1x4x8x8xbf16, #tpu.memory_space<vmem>>, vector<1x1x8x8xbf16>,
    %18 = vector.extract_strided_slice %5 {offsets = [0, 24], sizes = [8, 8], strides = [1, 1]} : vector<8x32xbf16> to vector<8x8xbf16>
    %c0_15 = arith.constant 0 : index
    %c3 = arith.constant 3 : index
    %c0_16 = arith.constant 0 : index
    %c0_17 = arith.constant 0 : index
    %19 = vector.load %arg6[%c0_15, %c3, %c0_16, %c0_17] : memref<1x4x8x8xbf16, #tpu.memory_space<vmem>>, vector<1x1x8x8xbf16>
    %20 = vector.shape_cast %19 : vector<1x1x8x8xbf16> to vector<8x8xbf16>
    %21 = vector.shape_cast %18 : vector<8x8xbf16> to vector<1x1x8x8xbf16>
    tpu.vector_store %arg6[%c0_15, %c3, %c0_16, %c0_17], %21 {strides = array<i32>} : memref<1x4x8x8xbf16, #tpu.memory_space<vmem>>, vector<1x1x8x8xbf16>,
    %c0_18 = arith.constant 0 : index
    %c0_19 = arith.constant 0 : index
    %c0_20 = arith.constant 0 : index
    %22 = vector.load %arg3[%c0_18, %c0_19, %c0_20] : memref<1x8x32xbf16, #tpu.memory_space<vmem>>, vector<1x8x32xbf16>
    %23 = vector.shape_cast %22 : vector<1x8x32xbf16> to vector<8x32xbf16>
    %c1_21 = arith.constant 1 : index
    %c0_22 = arith.constant 0 : index
    %c0_23 = arith.constant 0 : index
    %24 = vector.load %arg5[%c1_21, %c0_22, %c0_23] : memref<3x32x32xbf16, #tpu.memory_space<vmem>>, vector<1x32x32xbf16>
    %25 = vector.shape_cast %24 : vector<1x32x32xbf16> to vector<32x32xbf16>
    %cst_24 = arith.constant dense<0.000000e+00> : vector<8x32xf32>
    %26 = tpu.matmul %23, %25, %cst_24 {dimension_numbers = #tpu.dot_dimension_numbers<[1], [1], [0], [0], [0, 0, 1, 0], [], []>} : vector<8x32xbf16>, vector<32x32xbf16>, vector<8x32xf32> -> vector<8x32xf32>
    %27 = arith.truncf %26 : vector<8x32xf32> to vector<8x32xbf16>
    %28 = vector.extract_strided_slice %27 {offsets = [0, 0], sizes = [8, 8], strides = [1, 1]} : vector<8x32xbf16> to vector<8x8xbf16>
    %c0_25 = arith.constant 0 : index
    %c0_26 = arith.constant 0 : index
    %c0_27 = arith.constant 0 : index
    %c0_28 = arith.constant 0 : index
    %29 = vector.load %arg7[%c0_25, %c0_26, %c0_27, %c0_28] : memref<1x4x8x8xbf16, #tpu.memory_space<vmem>>, vector<1x1x8x8xbf16>
    %30 = vector.shape_cast %29 : vector<1x1x8x8xbf16> to vector<8x8xbf16>
    %31 = vector.shape_cast %28 : vector<8x8xbf16> to vector<1x1x8x8xbf16>
    tpu.vector_store %arg7[%c0_25, %c0_26, %c0_27, %c0_28], %31 {strides = array<i32>} : memref<1x4x8x8xbf16, #tpu.memory_space<vmem>>, vector<1x1x8x8xbf16>,
    %32 = vector.extract_strided_slice %27 {offsets = [0, 8], sizes = [8, 8], strides = [1, 1]} : vector<8x32xbf16> to vector<8x8xbf16>
    %c0_29 = arith.constant 0 : index
    %c1_30 = arith.constant 1 : index
    %c0_31 = arith.constant 0 : index
    %c0_32 = arith.constant 0 : index
    %33 = vector.load %arg7[%c0_29, %c1_30, %c0_31, %c0_32] : memref<1x4x8x8xbf16, #tpu.memory_space<vmem>>, vector<1x1x8x8xbf16>
    %34 = vector.shape_cast %33 : vector<1x1x8x8xbf16> to vector<8x8xbf16>
    %35 = vector.shape_cast %32 : vector<8x8xbf16> to vector<1x1x8x8xbf16>
    tpu.vector_store %arg7[%c0_29, %c1_30, %c0_31, %c0_32], %35 {strides = array<i32>} : memref<1x4x8x8xbf16, #tpu.memory_space<vmem>>, vector<1x1x8x8xbf16>,
    %36 = vector.extract_strided_slice %27 {offsets = [0, 16], sizes = [8, 8], strides = [1, 1]} : vector<8x32xbf16> to vector<8x8xbf16>
    %c0_33 = arith.constant 0 : index
    %c2_34 = arith.constant 2 : index
    %c0_35 = arith.constant 0 : index
    %c0_36 = arith.constant 0 : index
    %37 = vector.load %arg7[%c0_33, %c2_34, %c0_35, %c0_36] : memref<1x4x8x8xbf16, #tpu.memory_space<vmem>>, vector<1x1x8x8xbf16>
    %38 = vector.shape_cast %37 : vector<1x1x8x8xbf16> to vector<8x8xbf16>
    %39 = vector.shape_cast %36 : vector<8x8xbf16> to vector<1x1x8x8xbf16>
    tpu.vector_store %arg7[%c0_33, %c2_34, %c0_35, %c0_36], %39 {strides = array<i32>} : memref<1x4x8x8xbf16, #tpu.memory_space<vmem>>, vector<1x1x8x8xbf16>,
    %40 = vector.extract_strided_slice %27 {offsets = [0, 24], sizes = [8, 8], strides = [1, 1]} : vector<8x32xbf16> to vector<8x8xbf16>
    %c0_37 = arith.constant 0 : index
    %c3_38 = arith.constant 3 : index
    %c0_39 = arith.constant 0 : index
    %c0_40 = arith.constant 0 : index
    %41 = vector.load %arg7[%c0_37, %c3_38, %c0_39, %c0_40] : memref<1x4x8x8xbf16, #tpu.memory_space<vmem>>, vector<1x1x8x8xbf16>
    %42 = vector.shape_cast %41 : vector<1x1x8x8xbf16> to vector<8x8xbf16>
    %43 = vector.shape_cast %40 : vector<8x8xbf16> to vector<1x1x8x8xbf16>
    tpu.vector_store %arg7[%c0_37, %c3_38, %c0_39, %c0_40], %43 {strides = array<i32>} : memref<1x4x8x8xbf16, #tpu.memory_space<vmem>>, vector<1x1x8x8xbf16>,
    %c0_41 = arith.constant 0 : index
    %c0_42 = arith.constant 0 : index
    %c0_43 = arith.constant 0 : index
    %44 = vector.load %arg4[%c0_41, %c0_42, %c0_43] : memref<1x8x32xbf16, #tpu.memory_space<vmem>>, vector<1x8x32xbf16>
    %45 = vector.shape_cast %44 : vector<1x8x32xbf16> to vector<8x32xbf16>
    %c2_44 = arith.constant 2 : index
    %c0_45 = arith.constant 0 : index
    %c0_46 = arith.constant 0 : index
    %46 = vector.load %arg5[%c2_44, %c0_45, %c0_46] : memref<3x32x32xbf16, #tpu.memory_space<vmem>>, vector<1x32x32xbf16>
    %47 = vector.shape_cast %46 : vector<1x32x32xbf16> to vector<32x32xbf16>
    %cst_47 = arith.constant dense<0.000000e+00> : vector<8x32xf32>
    %48 = tpu.matmul %45, %47, %cst_47 {dimension_numbers = #tpu.dot_dimension_numbers<[1], [1], [0], [0], [0, 0, 1, 0], [], []>} : vector<8x32xbf16>, vector<32x32xbf16>, vector<8x32xf32> -> vector<8x32xf32>
    %49 = arith.truncf %48 : vector<8x32xf32> to vector<8x32xbf16>
    %50 = vector.extract_strided_slice %49 {offsets = [0, 0], sizes = [8, 8], strides = [1, 1]} : vector<8x32xbf16> to vector<8x8xbf16>
    %c0_48 = arith.constant 0 : index
    %c0_49 = arith.constant 0 : index
    %c0_50 = arith.constant 0 : index
    %c0_51 = arith.constant 0 : index
    %51 = vector.load %arg8[%c0_48, %c0_49, %c0_50, %c0_51] : memref<1x4x8x8xbf16, #tpu.memory_space<vmem>>, vector<1x1x8x8xbf16>
    %52 = vector.shape_cast %51 : vector<1x1x8x8xbf16> to vector<8x8xbf16>
    %53 = vector.shape_cast %50 : vector<8x8xbf16> to vector<1x1x8x8xbf16>
    tpu.vector_store %arg8[%c0_48, %c0_49, %c0_50, %c0_51], %53 {strides = array<i32>} : memref<1x4x8x8xbf16, #tpu.memory_space<vmem>>, vector<1x1x8x8xbf16>,
    %54 = vector.extract_strided_slice %49 {offsets = [0, 8], sizes = [8, 8], strides = [1, 1]} : vector<8x32xbf16> to vector<8x8xbf16>
    %c0_52 = arith.constant 0 : index
    %c1_53 = arith.constant 1 : index
    %c0_54 = arith.constant 0 : index
    %c0_55 = arith.constant 0 : index
    %55 = vector.load %arg8[%c0_52, %c1_53, %c0_54, %c0_55] : memref<1x4x8x8xbf16, #tpu.memory_space<vmem>>, vector<1x1x8x8xbf16>
    %56 = vector.shape_cast %55 : vector<1x1x8x8xbf16> to vector<8x8xbf16>
    %57 = vector.shape_cast %54 : vector<8x8xbf16> to vector<1x1x8x8xbf16>
    tpu.vector_store %arg8[%c0_52, %c1_53, %c0_54, %c0_55], %57 {strides = array<i32>} : memref<1x4x8x8xbf16, #tpu.memory_space<vmem>>, vector<1x1x8x8xbf16>,
    %58 = vector.extract_strided_slice %49 {offsets = [0, 16], sizes = [8, 8], strides = [1, 1]} : vector<8x32xbf16> to vector<8x8xbf16>
    %c0_56 = arith.constant 0 : index
    %c2_57 = arith.constant 2 : index
    %c0_58 = arith.constant 0 : index
    %c0_59 = arith.constant 0 : index
    %59 = vector.load %arg8[%c0_56, %c2_57, %c0_58, %c0_59] : memref<1x4x8x8xbf16, #tpu.memory_space<vmem>>, vector<1x1x8x8xbf16>
    %60 = vector.shape_cast %59 : vector<1x1x8x8xbf16> to vector<8x8xbf16>
    %61 = vector.shape_cast %58 : vector<8x8xbf16> to vector<1x1x8x8xbf16>
    tpu.vector_store %arg8[%c0_56, %c2_57, %c0_58, %c0_59], %61 {strides = array<i32>} : memref<1x4x8x8xbf16, #tpu.memory_space<vmem>>, vector<1x1x8x8xbf16>,
    %62 = vector.extract_strided_slice %49 {offsets = [0, 24], sizes = [8, 8], strides = [1, 1]} : vector<8x32xbf16> to vector<8x8xbf16>
    %c0_60 = arith.constant 0 : index
    %c3_61 = arith.constant 3 : index
    %c0_62 = arith.constant 0 : index
    %c0_63 = arith.constant 0 : index
    %63 = vector.load %arg8[%c0_60, %c3_61, %c0_62, %c0_63] : memref<1x4x8x8xbf16, #tpu.memory_space<vmem>>, vector<1x1x8x8xbf16>
    %64 = vector.shape_cast %63 : vector<1x1x8x8xbf16> to vector<8x8xbf16>
    %65 = vector.shape_cast %62 : vector<8x8xbf16> to vector<1x1x8x8xbf16>
    tpu.vector_store %arg8[%c0_60, %c3_61, %c0_62, %c0_63], %65 {strides = array<i32>} : memref<1x4x8x8xbf16, #tpu.memory_space<vmem>>, vector<1x1x8x8xbf16>,
    return
  }
  func.func @transform_0(%arg0: i32, %arg1: i32) -> (i32, i32, i32) {
    %c0_i32 = arith.constant 0 : i32
    %c0_i32_0 = arith.constant 0 : i32
    return %arg0, %arg1, %c0_i32 : i32, i32, i32
  }
  func.func @transform_1(%arg0: i32, %arg1: i32) -> (i32, i32, i32) {
    %c0_i32 = arith.constant 0 : i32
    %c0_i32_0 = arith.constant 0 : i32
    return %arg0, %arg1, %c0_i32 : i32, i32, i32
  }
  func.func @transform_2(%arg0: i32, %arg1: i32) -> (i32, i32, i32) {
    %c0_i32 = arith.constant 0 : i32
    %c0_i32_0 = arith.constant 0 : i32
    return %arg0, %arg1, %c0_i32 : i32, i32, i32
  }
  func.func @transform_3(%arg0: i32, %arg1: i32) -> (i32, i32, i32) {
    %c0_i32 = arith.constant 0 : i32
    %c0_i32_0 = arith.constant 0 : i32
    %c0_i32_1 = arith.constant 0 : i32
    %c0_i32_2 = arith.constant 0 : i32
    return %c0_i32, %c0_i32_0, %c0_i32_1 : i32, i32, i32
  }
  func.func @transform_4(%arg0: i32, %arg1: i32) -> (i32, i32, i32, i32) {
    %c0_i32 = arith.constant 0 : i32
    %c0_i32_0 = arith.constant 0 : i32
    %c0_i32_1 = arith.constant 0 : i32
    return %arg0, %c0_i32, %arg1, %c0_i32_0 : i32, i32, i32, i32
  }
  func.func @transform_5(%arg0: i32, %arg1: i32) -> (i32, i32, i32, i32) {
    %c0_i32 = arith.constant 0 : i32
    %c0_i32_0 = arith.constant 0 : i32
    %c0_i32_1 = arith.constant 0 : i32
    return %arg0, %c0_i32, %arg1, %c0_i32_0 : i32, i32, i32, i32
  }
  func.func @transform_6(%arg0: i32, %arg1: i32) -> (i32, i32, i32, i32) {
    %c0_i32 = arith.constant 0 : i32
    %c0_i32_0 = arith.constant 0 : i32
    %c0_i32_1 = arith.constant 0 : i32
    return %arg0, %c0_i32, %arg1, %c0_i32_0 : i32, i32, i32, i32
  }
}

</mosaic_0001>

<bundles_post_ra>
// kernel: tpu_custom_call.1
= control target key start
LH: loop header
LB: loop body
LE: loop exit
PB: predicated region body
PF: predicated region fallthrough
CT: control target
= control target key end

     0   :  { %s1869_s0 = inlined_call_operand.hbm [shape: bf16[2,8,32], index: 0, kind: input, shape index: {}]   ;;  %s1870_s1 = inlined_call_operand.hbm [shape: bf16[2,8,32], index: 1, kind: input, shape index: {}]   ;;  %s1871_s2 = inlined_call_operand.hbm [shape: bf16[2,8,32], index: 2, kind: input, shape index: {}]   ;;  %s1872_s3 = inlined_call_operand.hbm [shape: bf16[3,32,32], index: 3, kind: input, shape index: {}]   ;;  %s1873_s4 = inlined_call_operand.hbm [shape: bf16[2,4,8,8], index: 4, kind: output, shape index: {0}]   ;;  %s1874_s5 = inlined_call_operand.hbm [shape: bf16[2,4,8,8], index: 5, kind: output, shape index: {1}]   ;;  %s1875_s6 = inlined_call_operand.hbm [shape: bf16[2,4,8,8], index: 6, kind: output, shape index: {2}]  }
   0x1   :  { %1896 = sst [smem:[#allocation25_spill]] %s1870_s1 }
   0x2   :  { %1897 = sst [smem:[#allocation26_spill]] %s1873_s4 }
   0x3   :  { %1898 = sst [smem:[#allocation27_spill]] %s1874_s5 }
   0x4   :  { %1899 = sst [smem:[#allocation28_spill]] %s1875_s6 }
   0x5   :  { %12 = vsyncpa [#allocation3], 0 }
   0x6   :  { %14 = vsyncpa [#allocation3 + $0x1], 0 }
   0x7   :  { %15 = vsyncpa [#allocation6], 0 }
   0x8   :  { %17 = vsyncpa [#allocation6 + $0x1], 0 }
   0x9   :  { %18 = vsyncpa [#allocation9], 0 }
   0xa   :  { %19 = vsyncpa [#allocation4], 0 }
   0xb   :  { %21 = vsyncpa [#allocation4 + $0x1], 0 }
   0xc   :  { %22 = vsyncpa [#allocation12], 0 }
   0xd   :  { %24 = vsyncpa [#allocation12 + $0x1], 0  ;;  %s1437_s21 = smov 0   ;;  %s1439_s22 = smov 0  }
   0xe   :  { %s1441_s23 = smov 0   ;;  %s1443_s24 = smov 0  }
   0xf   :  { %s1445_s25 = smov 0   ;;  %s1447_s26 = smov 0  }
  0x10 LB: > { %1900 = sst [smem:[#allocation19_spill]] %s1364_s21  ;;  %s42_s27 = sadd.s32 1, %s1380_s25  ;;  %s1384_s26 = sphi %s1447_s26, %s30_s26   ;;  %s1380_s25 = sphi %s1445_s25, %s1940_s25   ;;  %s1376_s24 = sphi %s1443_s24, %s1939_s24   ;;  %s1372_s23 = sphi %s1441_s23, %s1938_s23   ;;  %s1368_s22 = sphi %s1439_s22, %s1937_s22   ;;  %s1364_s21 = sphi %s1437_s21, %s1936_s21  }
  0x11   : > { %1901 = sst [smem:[#allocation20_spill]] %s1380_s25  ;;  %s51_s28 = sadd.s32 1, %s1372_s23 }
  0x12   : > { %1902 = sst [smem:[#allocation21_spill]] %s1384_s26  ;;  %p44_p0 = scmp.ge.s32.totalorder %s42_s27, 2 }
  0x13   : > { %p1876_p1 = scmp.ne.s32.totalorder %s1372_s23, %s1368_s22  ;;  %p59_p2 = scmp.eq.s32.totalorder %s1384_s26, 0 }
  0x14   : > { %s1942_s27 = smov (%p44_p0, %s42_s27), 0  ;;  %p1049_p5 = scmp.lt.s32.totalorder %s1384_s26, 2 }
  0x15   : > { %1903 = sst [smem:[#allocation22_spill]] %s1942_s27  ;;  %p60_p4 = por %p59_p2, %p1876_p1 }
  0x16   : > { %s46_s29 = ssub.s32 %s1380_s25, %s1942_s27  ;;  %s1878_s30 = sand.u32 1, %s1372_s23  }
  0x17   : > { %p49_p6 = scmp.eq.s32.totalorder %s46_s29, 0  ;;  %s1484_s7 = sshll.u32 %s1878_s30, 2 }
  0x18   : > { %s1487_s8 = sshll.u32 %s1380_s25, 6  ;;  %p1489_p7 = pnand %p1049_p5, %p60_p4 }
  0x19   : > { %s1494_s10 = scalar_select %p49_p6, %s1372_s23, %s51_s28  }
  0x1a   : > { %s1904_s9 = scalar_select %p1489_p7, 1, 0 }
  0x1b   : > { %1905 = sst [smem:[#allocation23_spill]] %s1494_s10  ;;  %s281_s11 = sand.u32 1, %s1384_s26  }
  0x1c   : > { %s1906_s1 = sld [smem:[#allocation25_spill]]  ;;  %s285_s15 = scalar_lea.vmem [#allocation5], %s1484_s7 }
  0x1d   : > { %s293_s16 = sshll.u32 %s285_s15, 4  ;;  %s1506_s17 = scalar_lea.sflag [#allocation6], %s281_s11  ;;  %s1504_s16 = int_to_ptr.vmem [resolvable:$true] %s293_s16 }
  0x1e   : > { %p1512_p9 = pneg %p1489_p7 }
  0x20   : > { %s1907_s19 = scalar_select %p1512_p9, 1, 0 }
  0x22   : > { %s1501_s14 = scalar_lea.hbm %s1906_s1, %s1487_s8  ;;  %s1121_s29 = scalar_lea.hbm %s1906_s1, 128 }
  0x23   : > { %s1116_s18 = scalar_lea.hbm %s1501_s14, 64  ;;  %p1122_p12 = scmp.lt.u32.totalorder %s1501_s14, %s1906_s1 }
  0x24   : > { %p1117_p8 = scmp.ne.s32.totalorder %s1501_s14, %s1116_s18  ;;  %p1123_p13 = scmp.lt.u32.totalorder %s1121_s29, %s1116_s18 }
  0x25   : > { %p1125_p2 = scmp.lt.u32.totalorder %s1116_s18, %s1501_s14 }
  0x26   : > { %p1119_p10 = pnand %p1512_p9, %p1117_p8  ;;  %p1124_p0 = por %p1123_p13, %p1122_p12 }
  0x28   : > { %p1120_p11 = pneg %p1119_p10  ;;  %p1126_p4 = por %p1125_p2, %p1124_p0 }
  0x2a   : > { %p1127_p5 = pnand %p1126_p4, %p1120_p11 }
  0x2c   : > { %1130 = shalt.err (!%p1127_p5)
}
  0x2d   : > { %s1131_s11 = scalar_lea.vmem %s1504_s16, 64  ;;  %s1386_s15 = smov [#allocation5]  }
  0x2e   : > { %p1132_p6 = scmp.ne.s32.totalorder %s1504_s16, %s1131_s11  ;;  %s1136_s20 = sshll.u32 %s1386_s15, 4  ;;  %s1137_s20 = int_to_ptr.vmem [resolvable:$false] %s1136_s20 }
  0x2f   : > { %s1138_s28 = scalar_lea.vmem %s1137_s20, 128  ;;  %p1139_p3 = scmp.lt.s32.totalorder %s1504_s16, %s1137_s20 }
  0x30   : > { %p1134_p8 = pnand %p1132_p6, %p1512_p9  ;;  %p1140_p1 = scmp.lt.s32.totalorder %s1138_s28, %s1131_s11 }
  0x32   : > { %p1135_p10 = pneg %p1134_p8  ;;  %p1141_p12 = por %p1140_p1, %p1139_p3 }
  0x34   : > { %p1142_p13 = pnand %p1141_p12, %p1135_p10 }
  0x36   : > { %1145 = shalt.err (!%p1142_p13)
}
  0x37   : > { %1034 = dma.hbm_to_vmem [thread:$0]  (!%p1489_p7), %s1501_s14, 64, %s1504_s16, %s1506_s17  }
  0x38   : > { %s1537_s18 = sadd.s32 4294967295, %s1384_s26   ;;  %s1877_s29 = sadd.s32 4294967294, %s1384_s26  }
  0x39   : > { %p64_p1 = scmp.ne.s32.totalorder %s1368_s22, %s1364_s21  ;;  %p1884_p3 = scmp.eq.s32.totalorder %s1537_s18, 0 }
  0x3a   : > { %p167_p11 = scmp.eq.s32.totalorder %s1537_s18, 1  ;;  %p173_p0 = scmp.eq.s32.totalorder %s1877_s29, 1 }
  0x3b   : > { %p920_p2 = scmp.ge.s32.totalorder %s1384_s26, 1  ;;  %p1549_p4 = por %p1884_p3, %p64_p1 }
  0x3c   : > { %p1909_p5 = scmp.ne.s32.totalorder %s1372_s23, %s1368_s22  ;;  %p1560_p8 = por %p173_p0, %p64_p1 }
  0x3d   : > { %s1908_s12 = scalar_select %p1549_p4, 1, 0 }
  0x3e   : > { %p1556_p6 = por %p167_p11, %p1909_p5  ;;  %p236_p10 = scmp.lt.s32.totalorder %s1384_s26, 3 }
  0x3f   : > { %s1911_s16 = scalar_select %p1560_p8, 1, 0 }
  0x40   : > { %s1910_s14 = scalar_select %p1556_p6, 1, 0 }
  0x41   : > { %1912 = sst [smem:[#allocation24_spill]] %s1911_s16  ;;  %p1565_p12 = pnand %p920_p2, %p236_p10 }
  0x42   : > { %s1387_s11 = smov [#allocation8]   ;;  %s1583_s30 = scalar_lea.hbm %s1869_s0, %s1487_s8 }
  0x43   : > { %s1913_s13 = scalar_select %p1565_p12, 1, 0 }
  0x44   : > { %s248_s15 = sshll.u32 %s1387_s11, 4  ;;  %p1024_p13 = pneg %p1565_p12  ;;  %s1569_s15 = int_to_ptr.vmem [resolvable:$true] %s248_s15 }
  0x45   : > { %s266_s1 = scalar_lea.vmem [#allocation2], %s1484_s7  ;;  %s1146_s10 = scalar_lea.hbm %s1872_s3, 768 }
  0x46   : > { %p1575_p11 = pnand %p1024_p13, %p1884_p3  ;;  %s274_s27 = sshll.u32 %s266_s1, 4  ;;  %s1586_s27 = int_to_ptr.vmem [resolvable:$true] %s274_s27 }
  0x47   : > { %p1147_p1 = scmp.ne.s32.totalorder %s1872_s3, %s1146_s10  ;;  %p1153_p10 = scmp.lt.u32.totalorder %s1146_s10, %s1872_s3 }
  0x48   : > { %p1148_p0 = pneg %p1575_p11 }
  0x4a   : > { %p1149_p2 = pnand %p1148_p0, %p1147_p1 }
  0x4c   : > { %p1150_p5 = pneg %p1149_p2 }
  0x4e   : > { %p1155_p13 = pnand %p1153_p10, %p1150_p5 }
  0x50   : > { %1158 = shalt.err (!%p1155_p13)
}
  0x51   : > { %s1159_s1 = scalar_lea.vmem %s1569_s15, 768  ;;  %p1167_p4 = scmp.lt.s32.totalorder %s1569_s15, %s1569_s15 }
  0x52   : > { %p1160_p3 = scmp.ne.s32.totalorder %s1569_s15, %s1159_s1  ;;  %p1168_p12 = scmp.lt.s32.totalorder %s1159_s1, %s1159_s1 }
  0x54   : > { %p1162_p8 = pnand %p1160_p3, %p1148_p0  ;;  %p1169_p7 = por %p1168_p12, %p1167_p4 }
  0x56   : > { %p1163_p6 = pneg %p1162_p8 }
  0x58   : > { %p1170_p9 = pnand %p1169_p7, %p1163_p6 }
  0x5a   : > { %1173 = shalt.err (!%p1170_p9)
}
  0x5b   : > { %s1388_s25 = smov 64   ;;  %s1389_s26 = smov 4  }
  0x5c   : > { %1027 = dma.hbm_to_vmem [thread:$0]  (!%p1575_p11), %s1872_s3, 768, %s1569_s15, [#allocation9], %s1388_s25, %s1388_s25, %s1389_s26  }
  0x5d   : > { %s1915_s11 = sand.u32 1, %s1372_s23   ;;  %s1174_s28 = scalar_lea.hbm %s1583_s30, 64 }
  0x5e   : > { %s263_s29 = scalar_lea.sflag [#allocation3], %s1915_s11  ;;  %p1175_p7 = scmp.ne.s32.totalorder %s1583_s30, %s1174_s28 }
  0x5f   : > { %p1916_p9 = scmp.ne.s32.totalorder %s1907_s19, 0  ;;  %s1179_s6 = scalar_lea.hbm %s1869_s0, 128 }
  0x60   : > { %p1180_p6 = scmp.lt.u32.totalorder %s1583_s30, %s1869_s0  ;;  %p1181_p8 = scmp.lt.u32.totalorder %s1179_s6, %s1174_s28 }
  0x61   : > { %p1177_p3 = pnand %p1175_p7, %p1916_p9  ;;  %p1183_p1 = scmp.lt.u32.totalorder %s1174_s28, %s1583_s30 }
  0x62   : > { %p1182_p12 = por %p1181_p8, %p1180_p6 }
  0x63   : > { %p1178_p4 = pneg %p1177_p3 }
  0x64   : > { %p1184_p0 = por %p1183_p1, %p1182_p12 }
  0x66   : > { %p1185_p11 = pnand %p1184_p0, %p1178_p4 }
  0x68   : > { %1188 = shalt.err (!%p1185_p11)
}
  0x69   : > { %s1189_s15 = scalar_lea.vmem %s1586_s27, 64  ;;  %s1390_s21 = smov [#allocation2]  }
  0x6a   : > { %p1190_p2 = scmp.ne.s32.totalorder %s1586_s27, %s1189_s15  ;;  %s1194_s20 = sshll.u32 %s1390_s21, 4  ;;  %s1195_s20 = int_to_ptr.vmem [resolvable:$false] %s1194_s20 }
  0x6b   : > { %s1196_s4 = scalar_lea.vmem %s1195_s20, 128  ;;  %p1197_p13 = scmp.lt.s32.totalorder %s1586_s27, %s1195_s20 }
  0x6c   : > { %p1192_p5 = pnand %p1190_p2, %p1916_p9  ;;  %p1198_p7 = scmp.lt.s32.totalorder %s1196_s4, %s1189_s15 }
  0x6e   : > { %p1193_p10 = pneg %p1192_p5  ;;  %p1199_p3 = por %p1198_p7, %p1197_p13 }
  0x70   : > { %p1200_p6 = pnand %p1199_p3, %p1193_p10 }
  0x72   : > { %1203 = shalt.err (!%p1200_p6)
}
  0x73   : > { %p1917_p4 = scmp.ne.s32.totalorder %s1904_s9, 0  ;;  %s1636_s25 = scalar_lea.hbm %s1871_s2, %s1487_s8 }
  0x74   : > { %s304_s26 = scalar_lea.vmem [#allocation7], %s1484_s7  ;;  %s1204_s16 = scalar_lea.hbm %s1636_s25, 64 }
  0x75   : > { %1031 = dma.hbm_to_vmem [thread:$0]  (!%p1917_p4), %s1583_s30, 64, %s1586_s27, %s263_s29  }
  0x76   : > { %s312_s10 = sshll.u32 %s304_s26, 4  ;;  %p1205_p8 = scmp.ne.s32.totalorder %s1636_s25, %s1204_s16  ;;  %s313_s10 = int_to_ptr.vmem [resolvable:$true] %s312_s10 }
  0x77   : > { %s1209_s27 = scalar_lea.hbm %s1871_s2, 128  ;;  %p1210_p0 = scmp.lt.u32.totalorder %s1636_s25, %s1871_s2 }
  0x78   : > { %p1207_p12 = pnand %p1205_p8, %p1916_p9  ;;  %p1211_p11 = scmp.lt.u32.totalorder %s1209_s27, %s1204_s16 }
  0x79   : > { %p1213_p5 = scmp.lt.u32.totalorder %s1204_s16, %s1636_s25 }
  0x7a   : > { %p1208_p1 = pneg %p1207_p12  ;;  %p1212_p2 = por %p1211_p11, %p1210_p0 }
  0x7c   : > { %p1214_p10 = por %p1213_p5, %p1212_p2 }
  0x7e   : > { %p1215_p13 = pnand %p1214_p10, %p1208_p1 }
  0x80   : > { %1218 = shalt.err (!%p1215_p13)
}
  0x81   : > { %s1219_s7 = scalar_lea.vmem %s313_s10, 64  ;;  %s1391_s8 = smov [#allocation7]  }
  0x82   : > { %p1220_p7 = scmp.ne.s32.totalorder %s313_s10, %s1219_s7  ;;  %s1224_s1 = sshll.u32 %s1391_s8, 4  ;;  %s1225_s1 = int_to_ptr.vmem [resolvable:$false] %s1224_s1 }
  0x83   : > { %s1226_s15 = scalar_lea.vmem %s1225_s1, 128  ;;  %p1227_p8 = scmp.lt.s32.totalorder %s313_s10, %s1225_s1 }
  0x84   : > { %p1222_p3 = pnand %p1220_p7, %p1916_p9  ;;  %p1228_p12 = scmp.lt.s32.totalorder %s1226_s15, %s1219_s7 }
  0x86   : > { %p1223_p6 = pneg %p1222_p3  ;;  %p1229_p4 = por %p1228_p12, %p1227_p8 }
  0x88   : > { %p1230_p0 = pnand %p1229_p4, %p1223_p6 }
  0x8a   : > { %1233 = shalt.err (!%p1230_p0)
}
  0x8b   : > { %p1918_p11 = scmp.ne.s32.totalorder %s1904_s9, 0  ;;  %p1919_p1 = scmp.ne.s32.totalorder %s1913_s13, 0 }
  0x8c   : > { %s1660_s19 = sand.u32 (!%p1919_p1), 1, %s1368_s22   ;;  %p1920_p9 = scmp.ne.s32.totalorder (!%p1919_p1), %s1908_s12, 0 }
  0x8d   : > { %1037 = dma.hbm_to_vmem [thread:$0]  (!%p1918_p11), %s1636_s25, 64, %s313_s10, %s1506_s17  }
  0x8e   : > { %321 = sbr.rel (%p1919_p1) target bundleno = 570 (0x23a), region = 36  ;;  %s1663_s21 = sshll.u32 (!%p1919_p1), %s1660_s19, 2 }
  0x8f   : > { %s324_s20 = scalar_lea.sflag (!%p1919_p1), [#allocation3], %s1660_s19  ;;  %s327_s4 = scalar_lea.vmem (!%p1919_p1), [#allocation2], %s1663_s21 }
  0x95   : > { %1343 = dma.done.wait (%p1920_p9), %s324_s20, 64  }
  0x96   : > { %1345 = vsyncadd (%p1920_p9), %s324_s20, 4294967232  ;;  %s332_s9 = sand.u32 1, %s1537_s18   ;;  %s336_s13 = scalar_lea.vmem [#allocation5], %s1663_s21 }
  0x97   : > { %s333_s17 = scalar_lea.sflag [#allocation6], %s332_s9 }
  0x98   : > { %1347 = dma.done.wait (%p1920_p9), %s333_s17, 128  }
  0x99   : > { %1349 = vsyncadd (%p1920_p9), %s333_s17, 4294967168  ;;  %s345_s5 = scalar_lea.vmem [#allocation7], %s1663_s21  ;;  %p1921_p4 = scmp.eq.s32.totalorder %s1537_s18, 0 }
  0x9b   : > { %1351 = dma.done.wait (%p1921_p4), [#allocation9], 768   ;;  %p1922_p2 = pmov %p1921_p4 }
  0x9c   : > { %v1392_v0 = vmov 0.0   ;;  %vm1393_vm0 = vmmov 0   ;;  %vm414_vm1 = vcmask 261120   ;;  %v1110_v1 = vld [vmem:[#allocation8] sm:$0xff]   ;;  %v1111_v2 = vld [vmem:[#allocation8 + $0x10] sm:$0xff]   ;;  %v1112_v5 = vld [vmem:[#allocation8 + $0x8] sm:$0xff]  }
  0x9d   : > { %1353 = vsyncadd (%p1922_p2), [#allocation9], 4294966528  ;;  %984 = vmatprep.subr.bf16.mxu0 %v1392_v0  ;;  %992 = vmatprep.subr.bf16.mxu1 %v1392_v0  ;;  %v419_v3 = vsel %vm414_vm1, %v1110_v1, 0  ;;  %v505_v4 = vsel %vm414_vm1, %v1111_v2, 0  ;;  %v1113_v6 = vld [vmem:[#allocation8 + $0x18] sm:$0xff]   ;;  %v422_v7 = vsel %vm414_vm1, %v1112_v5, 0 }
  0x9e   : > { %988 = vmatprep.mubr.msk.bf16.mxu0 %vm1393_vm0, %v1392_v0  ;;  %996 = vmatprep.mubr.msk.bf16.mxu1 %vm1393_vm0, %v1392_v0  ;;  %v508_v8 = vsel %vm414_vm1, %v1113_v6, 0  ;;  %v1114_v9 = vld [vmem:[#allocation8 + $0x20] sm:$0xff]   ;;  %v399_v10 = vld [vmem:[%s327_s4] sm:$0xf]  ;;  %v485_v11 = vld [vmem:[%s336_s13] sm:$0xf] }
  0x9f   : > { %985 = vmatpush3.bf16.xpose.msra.mxu0 %v419_v3  ;;  %993 = vmatpush3.bf16.xpose.msra.mxu1 %v505_v4  ;;  %v590_v12 = vsel %vm414_vm1, %v1114_v9, 0  ;;  %v1115_v13 = vld [vmem:[#allocation8 + $0x28] sm:$0xff]   ;;  %v570_v15 = vld [vmem:[%s345_s5] sm:$0xf]  ;;  %s934_s12 = sshll.u32 %s1660_s19, 4  ;;  %vm465_vm2 = vcmask 60416  }
  0xa0   : > { %986 = vmatprep.subr.bf16.mxu0 %v1392_v0  ;;  %994 = vmatprep.subr.bf16.mxu1 %v1392_v0  ;;  %v593_v14 = vsel %vm414_vm1, %v1115_v13, 0  ;;  %s1703_s6 = scalar_lea.vmem [#allocation10], %s934_s12  ;;  %s1707_s25 = scalar_lea.vmem [#allocation11], %s934_s12 }
  0xa1   : > { %s1394_s26 = smov 104   ;;  %s1395_s10 = smov 120  }
  0xa2   : > { %s1396_s16 = smov 112   ;;  %s1711_s11 = scalar_lea.vmem [#allocation13], %s934_s12 }
  0xa3   : > { %s697_s28 = sshll.u32 %s1707_s25, 4  ;;  %s1717_s27 = sshll.u32 %s1376_s24, 8  ;;  %s1720_s28 = int_to_ptr.vmem [resolvable:$true] %s697_s28 }
  0xa4   : > { %s680_s30 = sshll.u32 %s1703_s6, 4  ;;  %s1923_s8 = sld [smem:[#allocation27_spill]]  ;;  %s1732_s30 = int_to_ptr.vmem [resolvable:$true] %s680_s30 }
  0xa5   : > { %s1740_s24 = scalar_lea.sflag [#allocation12], %s332_s9  ;;  %s1234_s15 = scalar_lea.vmem %s1720_s28, 256 }
  0xa6   : > { %p1235_p5 = scmp.ne.s32.totalorder %s1720_s28, %s1234_s15  ;;  %p1924_p10 = scmp.ne.s32.totalorder %s1910_s14, 0 }
  0xa7   : > { %987 = vmatpush3.bf16.xpose.msra.mxu0 %v422_v7  ;;  %995 = vmatpush3.bf16.xpose.msra.mxu1 %v508_v8  ;;  %s1397_s21 = smov [#allocation11]  }
  0xa8   : > { %1000 = vmatprep.subr.bf16.mxu0 %v1392_v0  ;;  %p1236_p13 = pnand %p1235_p5, %p1924_p10  ;;  %s1238_s20 = sshll.u32 %s1397_s21, 4  ;;  %s1239_s20 = int_to_ptr.vmem [resolvable:$false] %s1238_s20 }
  0xa9   : > { %s1240_s4 = scalar_lea.vmem %s1239_s20, 512  ;;  %p1241_p3 = scmp.lt.s32.totalorder %s1720_s28, %s1239_s20 }
  0xaa   : > { %s1730_s1 = scalar_lea.hbm %s1923_s8, %s1717_s27  ;;  %p1237_p7 = pneg %p1236_p13 }
  0xab   : > { %p1242_p6 = scmp.lt.s32.totalorder %s1240_s4, %s1234_s15 }
  0xad   : > { %p1243_p8 = por %p1242_p6, %p1241_p3 }
  0xae   : > { %989 = vmatmul.mubr.msk.bf16.vlgmr.msra.gmra.mrb[0].mxu0 %vm414_vm1, %v399_v10  ;;  %997 = vmatmul.mubr.msk.bf16.vlgmr.msra.gmra.mrb[0].mxu1 %vm414_vm1, %v485_v11 }
  0xaf   : > { %1001 = vmatpush3.bf16.xpose.msra.mxu0 %v590_v12  ;;  %1004 = vmatprep.mubr.msk.bf16.mxu0 %vm1393_vm0, %v1392_v0  ;;  %p1244_p12 = pnand %p1243_p8, %p1237_p7 }
  0xb0   : > { %1002 = vmatprep.subr.bf16.mxu0 %v1392_v0 }
  0xb7   : > { %1003 = vmatpush3.bf16.xpose.msra.mxu0 %v593_v14 }
  0xbe   : > { %1005 = vmatmul.mubr.msk.bf16.vlgmr.msra.gmra.mrb[4].mxu0 %vm414_vm1, %v570_v15 }
 0x181   : > { %v458_v16 = vpop.f32.mrb[0].mxu0  ;;  %v544_v18 = vpop.f32.mrb[0].mxu1 }
 0x182   : > { %v464_v17 = vpack.c.bf16 %v458_v16, %v458_v16  ;;  %v990_v19 = vpop.f32.mrb[1].mxu0  ;;  %v550_v20 = vpack.c.bf16 %v544_v18, %v544_v18  ;;  %v998_v22 = vpop.f32.mrb[1].mxu1 }
 0x183   : > { %v461_v21 = vpop.f32.mrb[2].mxu0  ;;  %v547_v24 = vpop.f32.mrb[2].mxu1 }
 0x184   : > { %466 = vst.msk [vmem:[%s1703_s6] sm:$0xf] %vm465_vm2, %v464_v17  ;;  %v991_v23 = vpop.f32.mrb[3].mxu0  ;;  %551 = vst.msk [vmem:[%s1707_s25] sm:$0xf] %vm465_vm2, %v550_v20  ;;  %565 = vrot.lane.b32.xlu1 %v550_v20, %s1394_s26  ;;  %555 = vrot.lane.b32.xlu0 %v550_v20, %s1395_s10  ;;  %v999_v25 = vpop.f32.mrb[3].mxu1 }
 0x188   : > { %560 = vrot.lane.b32.xlu0 %v550_v20, %s1396_s16  ;;  %470 = vrot.lane.b32.xlu1 %v464_v17, %s1395_s10 }
 0x18c   : > { %475 = vrot.lane.b32.xlu0 %v464_v17, %s1396_s16  ;;  %480 = vrot.lane.b32.xlu1 %v464_v17, %s1394_s26 }
 0x191   : > { %v629_v26 = vpop.f32.mrb[4].mxu0 }
 0x192   : > { %v635_v27 = vpack.c.bf16 %v629_v26, %v629_v26  ;;  %v1006_v28 = vpop.f32.mrb[5].mxu0 }
 0x193   : > { %v632_v29 = vpop.f32.mrb[6].mxu0 }
 0x194   : > { %636 = vst.msk [vmem:[%s1711_s11] sm:$0xf] %vm465_vm2, %v635_v27  ;;  %645 = vrot.lane.b32.xlu1 %v635_v27, %s1396_s16  ;;  %640 = vrot.lane.b32.xlu0 %v635_v27, %s1395_s10  ;;  %v1007_v30 = vpop.f32.mrb[7].mxu0 }
 0x198   : > { %650 = vrot.lane.b32.xlu0 %v635_v27, %s1394_s26 }
 0x1f6   : > { %v566_v31 = vpop.permute.xlu1 %565  ;;  %v556_v32 = vpop.permute.xlu0 %555 }
 0x1f7   : > { %950 = vst.msk [vmem:[%s1707_s25 + $0xc] sm:$0xf] %vm465_vm2, %v566_v31  ;;  %948 = vst.msk [vmem:[%s1707_s25 + $0x4] sm:$0xf] %vm465_vm2, %v556_v32 }
 0x1fa   : > { %v561_v33 = vpop.permute.xlu0 %560  ;;  %v471_v34 = vpop.permute.xlu1 %470 }
 0x1fb   : > { %949 = vst.msk [vmem:[%s1707_s25 + $0x8] sm:$0xf] %vm465_vm2, %v561_v33  ;;  %941 = vst.msk [vmem:[%s1703_s6 + $0x4] sm:$0xf] %vm465_vm2, %v471_v34 }
 0x1fc   : > { %1247 = shalt.err (!%p1244_p12)
}
 0x1fd   : > { %s1248_s18 = scalar_lea.hbm %s1730_s1, 256  ;;  %s1252_s13 = scalar_lea.hbm %s1923_s8, 512 }
 0x1fe   : > { %p1249_p0 = scmp.ne.s32.totalorder %s1730_s1, %s1248_s18  ;;  %p1253_p9 = scmp.lt.u32.totalorder %s1730_s1, %s1923_s8 }
 0x1ff   : > { %p1254_p4 = scmp.lt.u32.totalorder %s1252_s13, %s1248_s18  ;;  %p1256_p5 = scmp.lt.u32.totalorder %s1248_s18, %s1730_s1 }
 0x200   : > { %p1250_p11 = pnand %p1249_p0, %p1924_p10 }
 0x201   : > { %p1255_p2 = por %p1254_p4, %p1253_p9 }
 0x202   : > { %p1251_p1 = pneg %p1250_p11 }
 0x203   : > { %p1257_p13 = por %p1256_p5, %p1255_p2 }
 0x205   : > { %p1258_p7 = pnand %p1257_p13, %p1251_p1 }
 0x207   : > { %1261 = shalt.err (!%p1258_p7)
}
 0x208   : > { %s1398_s25 = smov 64   ;;  %s1399_s26 = smov 4   ;;  %v476_v35 = vpop.permute.xlu0 %475  ;;  %v481_v36 = vpop.permute.xlu1 %480 }
 0x209   : > { %1019 = dma.vmem_to_hbm [thread:$0]  (%p1924_p10), %s1720_s28, 256, %s1730_s1, %s1740_s24, %s1398_s25, %s1398_s25, %s1399_s26  }
 0x20a   : > { %s1925_s29 = sld [smem:[#allocation26_spill]]  ;;  %942 = vst.msk [vmem:[%s1703_s6 + $0x8] sm:$0xf] %vm465_vm2, %v476_v35  ;;  %943 = vst.msk [vmem:[%s1703_s6 + $0xc] sm:$0xf] %vm465_vm2, %v481_v36  ;;  %s656_s15 = scalar_lea.sflag [#allocation4], %s1660_s19 }
 0x20b   : > { %s1262_s21 = scalar_lea.vmem %s1732_s30, 256  ;;  %s1400_s20 = smov [#allocation10]  }
 0x20c   : > { %p1263_p3 = scmp.ne.s32.totalorder %s1732_s30, %s1262_s21  ;;  %s1266_s4 = sshll.u32 %s1400_s20, 4  ;;  %s1267_s4 = int_to_ptr.vmem [resolvable:$false] %s1266_s4 }
 0x20d   : > { %s1268_s28 = scalar_lea.vmem %s1267_s4, 512  ;;  %p1269_p12 = scmp.lt.s32.totalorder %s1732_s30, %s1267_s4 }
 0x20e   : > { %p1264_p6 = pnand %p1263_p3, %p1924_p10  ;;  %p1270_p0 = scmp.lt.s32.totalorder %s1268_s28, %s1262_s21 }
 0x210   : > { %s1771_s7 = scalar_lea.hbm %s1925_s29, %s1717_s27  ;;  %p1265_p8 = pneg %p1264_p6 }
 0x211   : > { %p1271_p11 = por %p1270_p0, %p1269_p12 }
 0x213   : > { %p1272_p1 = pnand %p1271_p11, %p1265_p8 }
 0x215   : > { %1275 = shalt.err (!%p1272_p1)
}
 0x216   : > { %s1276_s6 = scalar_lea.hbm %s1771_s7, 256  ;;  %s1280_s9 = scalar_lea.hbm %s1925_s29, 512 }
 0x217   : > { %p1277_p9 = scmp.ne.s32.totalorder %s1771_s7, %s1276_s6  ;;  %p1281_p5 = scmp.lt.u32.totalorder %s1771_s7, %s1925_s29 }
 0x218   : > { %p1282_p13 = scmp.lt.u32.totalorder %s1280_s9, %s1276_s6  ;;  %p1284_p3 = scmp.lt.u32.totalorder %s1276_s6, %s1771_s7 }
 0x219   : > { %p1278_p4 = pnand %p1277_p9, %p1924_p10 }
 0x21a   : > { %p1283_p7 = por %p1282_p13, %p1281_p5 }
 0x21b   : > { %p1279_p2 = pneg %p1278_p4 }
 0x21c   : > { %p1285_p6 = por %p1284_p3, %p1283_p7 }
 0x21e   : > { %p1286_p8 = pnand %p1285_p6, %p1279_p2 }
 0x220   : > { %1289 = shalt.err (!%p1286_p8)
}
 0x221   : > { %1018 = dma.vmem_to_hbm [thread:$0]  (%p1924_p10), %s1732_s30, 256, %s1771_s7, %s656_s15, %s1398_s25, %s1398_s25, %s1399_s26   ;;  %v646_v37 = vpop.permute.xlu1 %645  ;;  %v641_v38 = vpop.permute.xlu0 %640 }
 0x222   : > { %s714_s5 = sshll.u32 %s1711_s11, 4  ;;  %956 = vst.msk [vmem:[%s1711_s11 + $0x8] sm:$0xf] %vm465_vm2, %v646_v37  ;;  %955 = vst.msk [vmem:[%s1711_s11 + $0x4] sm:$0xf] %vm465_vm2, %v641_v38  ;;  %s1926_s10 = sld [smem:[#allocation28_spill]]  ;;  %s1809_s5 = int_to_ptr.vmem [resolvable:$true] %s714_s5 }
 0x223   : > { %s1290_s30 = scalar_lea.vmem %s1809_s5, 256  ;;  %s1401_s7 = smov [#allocation13]  }
 0x224   : > { %p1291_p12 = scmp.ne.s32.totalorder %s1809_s5, %s1290_s30  ;;  %s1294_s15 = sshll.u32 %s1401_s7, 4  ;;  %s1295_s15 = int_to_ptr.vmem [resolvable:$false] %s1294_s15 }
 0x225   : > { %v651_v39 = vpop.permute.xlu0 %650  ;;  %s1296_s21 = scalar_lea.vmem %s1295_s15, 512  ;;  %p1297_p1 = scmp.lt.s32.totalorder %s1809_s5, %s1295_s15 }
 0x226   : > { %957 = vst.msk [vmem:[%s1711_s11 + $0xc] sm:$0xf] %vm465_vm2, %v651_v39  ;;  %p1292_p0 = pnand %p1291_p12, %p1924_p10  ;;  %p1298_p9 = scmp.lt.s32.totalorder %s1296_s21, %s1290_s30 }
 0x228   : > { %s1815_s16 = scalar_lea.hbm %s1926_s10, %s1717_s27  ;;  %p1293_p11 = pneg %p1292_p0 }
 0x229   : > { %p1299_p4 = por %p1298_p9, %p1297_p1 }
 0x22b   : > { %p1300_p2 = pnand %p1299_p4, %p1293_p11 }
 0x22d   : > { %1303 = shalt.err (!%p1300_p2)
}
 0x22e   : > { %s1304_s11 = scalar_lea.hbm %s1815_s16, 256  ;;  %s1308_s4 = scalar_lea.hbm %s1926_s10, 512 }
 0x22f   : > { %p1305_p5 = scmp.ne.s32.totalorder %s1815_s16, %s1304_s11  ;;  %p1309_p3 = scmp.lt.u32.totalorder %s1815_s16, %s1926_s10 }
 0x230   : > { %p1310_p6 = scmp.lt.u32.totalorder %s1308_s4, %s1304_s11  ;;  %p1312_p12 = scmp.lt.u32.totalorder %s1304_s11, %s1815_s16 }
 0x231   : > { %p1306_p13 = pnand %p1305_p5, %p1924_p10 }
 0x232   : > { %p1311_p8 = por %p1310_p6, %p1309_p3 }
 0x233   : > { %p1307_p7 = pneg %p1306_p13 }
 0x234   : > { %p1313_p0 = por %p1312_p12, %p1311_p8 }
 0x236   : > { %p1314_p11 = pnand %p1313_p0, %p1307_p7 }
 0x238   : > { %1317 = shalt.err (!%p1314_p11)
}
 0x239   : > { %1020 = dma.vmem_to_hbm [thread:$0]  (%p1924_p10), %s1809_s5, 256, %s1815_s16, %s1740_s24, %s1398_s25, %s1398_s25, %s1399_s26  }
 0x23a PF: > { %s1927_s1 = sld [smem:[#allocation19_spill]]  ;;  %s1928_s18 = sld [smem:[#allocation24_spill]] }
 0x23b   : > { %s1929_s9 = sld [smem:[#allocation21_spill]] }
 0x240   : > { %s729_s17 = sand.u32 1, %s1927_s1   ;;  %p1930_p1 = scmp.ne.s32.totalorder %s1928_s18, 0 }
 0x241   : > { %p1931_p9 = scmp.ge.s32.totalorder %s1929_s9, 2  ;;  %s730_s13 = scalar_lea.sflag [#allocation4], %s729_s17 }
 0x243   : > { %p1039_p4 = pnand %p1931_p9, %p1930_p1 }
 0x245   : > { %1355 = dma.done.wait (!%p1039_p4), %s730_s13, 256  }
 0x246   : > { %1357 = vsyncadd (!%p1039_p4), %s730_s13, 4294967040  ;;  %s1932_s14 = sadd.s32 4294967294, %s1929_s9  }
 0x247   : > { %s738_s12 = sand.u32 1, %s1932_s14  }
 0x248   : > { %s739_s19 = scalar_lea.sflag [#allocation12], %s738_s12 }
 0x249   : > { %1359 = dma.done.wait (!%p1039_p4), %s739_s19, 512  }
 0x24a   : > { %1361 = vsyncadd (!%p1039_p4), %s739_s19, 4294966784  ;;  %s30_s26 = sadd.s32 1, %s1929_s9   ;;  %s1933_s24 = sld [smem:[#allocation23_spill]] }
 0x24b   : > { %p27_p10 = scmp.ge.s32.totalorder %s30_s26, 4   ;;  %s1934_s25 = sld [smem:[#allocation20_spill]] }
 0x24c   : > { %s1935_s5 = sld [smem:[#allocation22_spill]]  ;;  %s1936_s21 = smov %s1368_s22 }
 0x24d   : > { %s1937_s22 = smov %s1372_s23  ;;  %29 = sbr.rel (!%p27_p10) target bundleno = 16 (0x10), region = 152 }
 0x250   : > { %s1938_s23 = smov %s1933_s24 }
 0x251   : > { %s1939_s24 = smov %s1934_s25 }
 0x252   : > { %s1940_s25 = smov %s1935_s5 }
 0x254   :  { %753 = vsyncpa [#allocation3], 1 }
 0x255   :  { %755 = vsyncpa [#allocation3 + $0x1], 1 }
 0x256   :  { %756 = vsyncpa [#allocation6], 1 }
 0x257   :  { %758 = vsyncpa [#allocation6 + $0x1], 1 }
 0x258   :  { %759 = vsyncpa [#allocation9], 1 }
 0x259   :  { %760 = vsyncpa [#allocation4], 1 }
 0x25a   :  { %762 = vsyncpa [#allocation4 + $0x1], 1 }
 0x25b   :  { %763 = vsyncpa [#allocation12], 1 }
 0x25c   :  { %765 = vsyncpa [#allocation12 + $0x1], 1 }

</bundles_post_ra>
